<compile_context>
chip_gen: v5e
topology: v5e:2x2
jax: 0.10.0
libtpu: 0.0.40
codegen_flags: <defaults>
</compile_context>

<pallas_src>
import jax
import jax.numpy as jnp
from jax.experimental import pallas as pl
from jax.experimental.pallas import tpu as pltpu


# ---------------------------------------------------------------------------
# Kernel body: pass-through of the current VMEM tile.  Concrete subclasses
# fuse elementwise per-layer compute here so activations stay in VMEM (one
# HBM read + one HBM write total, not one round trip per layer).  Keep it
# store-light (write o_ref exactly once per tile): v5e has a single vst slot.
# ---------------------------------------------------------------------------
def _copy_kernel(x_ref, o_ref):
    o_ref[...] = x_ref[...]


# Keep per-step work >= ~1 MiB so the ~0.35 us (~600 cyc) per-grid-step
# overhead stays in the noise (measured copy kernels plateau at ~85-86% of
# HBM roofline once tiles reach the 512-row / MiB range).
_MIN_TILE_BYTES = 1 * 1024 * 1024
_TARGET_MIN_GRID_STEPS = 4  # >= 2 TCs on v7x each get >= 2 steps of work


def _sublane_multiple(dtype):
    """Native sublane packing for the dtype: 8 (>=32b), 16 (16b), 32 (8b)."""
    bits = jnp.dtype(dtype).itemsize * 8
    if bits >= 32:
        return 8
    if bits == 16:
        return 16
    return 32


def _vmem_capacity_bytes():
    """Physical VMEM of the current chip (trace-time query), with a
    conservative fallback of 64 MiB (the v7x floor)."""
    try:
        info = pltpu.get_tpu_info()
        cap = getattr(info, "vmem_capacity_bytes", None)
        if cap:
            return int(cap)
    except Exception:
        pass
    return 64 * 1024 * 1024


def _vmem_budget():
    """Return (tile_budget_bytes, vmem_limit_bytes).

    vmem_limit: half of physical VMEM, capped at 64 MiB
      -> 64 MiB on v5e/v6e (128 MiB physical), 32 MiB on v7x (64 MiB physical).
    tile budget: 1/8 of the limit, so 4 live double-buffered tiles
      (2 in + 2 out) occupy at most half the limit, leaving headroom for
      fused-layer scratch added by subclasses.
    """
    physical = _vmem_capacity_bytes()
    vmem_limit = min(physical // 2, 64 * 1024 * 1024)
    return vmem_limit // 8, vmem_limit


def _round_down(v, m):
    return max(m, (v // m) * m)


def _round_up(v, m):
    return ((v + m - 1) // m) * m


def _lane_dense_view(x):
    """Flatten to a 2-D slab whose last dim is a multiple of 128 (lane-dense,
    unmasked full-vreg stores) and whose row count is a multiple of the
    dtype's sublane packing.  Awkward sizes are padded (pad is sliced off in
    the wrapper) — never fall back to a sub-128 last dim."""
    sublane = _sublane_multiple(x.dtype)
    total = x.size
    for lane in (1024, 512, 256, 128):
        if total % lane == 0 and (total // lane) % sublane == 0:
            return x.reshape(total // lane, lane), total
    # Awkward size: pad to a multiple of (sublane * 1024) elements and use a
    # 1024-wide lane-dense slab.  Max pad is tiny (<= 32 KiB for bf16) and the
    # one-time pad/slice is far cheaper than masked stores on every tile.
    lane = 1024
    chunk = sublane * lane
    padded = _round_up(total, chunk)
    flat = jnp.pad(x.reshape(-1), (0, padded - total))
    return flat.reshape(padded // lane, lane), total


def _pick_tile_rows(rows, lane, itemsize, sublane, tile_budget_bytes):
    """Tile row count: as big as the VMEM budget allows, but split into
    >= _TARGET_MIN_GRID_STEPS steps on large inputs so both v7x TensorCores
    get work, and never below ~1 MiB per step.  Always a sublane multiple."""
    row_bytes = lane * itemsize
    budget_rows = _round_down(tile_budget_bytes // row_bytes, sublane)
    min_rows = _round_down(_MIN_TILE_BYTES // row_bytes, sublane)
    split_rows = _round_up(pl.cdiv(rows, _TARGET_MIN_GRID_STEPS), sublane)
    tile_r = min(budget_rows, max(min_rows, split_rows))
    return max(sublane, min(rows, tile_r))


@jax.jit
def pallas_passthrough(x):
    """Tiled, lane-dense, megacore-parallel VMEM pass-through of an NCHW
    tensor.  Fusion point for elementwise subclass layers; a pure identity
    for the base class."""
    orig_shape = x.shape
    x2d, total = _lane_dense_view(x)
    rows, lane = x2d.shape
    itemsize = x2d.dtype.itemsize
    sublane = _sublane_multiple(x2d.dtype)
    tile_budget, vmem_limit = _vmem_budget()
    tile_r = _pick_tile_rows(rows, lane, itemsize, sublane, tile_budget)

    y2d = pl.pallas_call(
        _copy_kernel,
        out_shape=jax.ShapeDtypeStruct((rows, lane), x2d.dtype),
        grid_spec=pl.GridSpec(
            grid=(pl.cdiv(rows, tile_r),),
            in_specs=[pl.BlockSpec((tile_r, lane), lambda i: (i, 0))],
            out_specs=pl.BlockSpec((tile_r, lane), lambda i: (i, 0)),
        ),
        # In-place buffer reuse / donation of the (internal) input slab.
        # This halves the HBM *footprint*; it does NOT remove the 1-read +
        # 1-write HBM traffic of the pass (corrected expectation).
        input_output_aliases={0: 0},
        # Accurate mem-bound cost so XLA can overlap neighbours with this call.
        cost_estimate=pl.CostEstimate(
            flops=0,
            transcendentals=0,
            bytes_accessed=2 * rows * lane * itemsize,
        ),
        compiler_params=pltpu.CompilerParams(
            dimension_semantics=("parallel",),
            vmem_limit_bytes=vmem_limit,
        ),
    )(x2d)

    if y2d.size != total:  # padded awkward-size path: slice the pad back off
        return y2d.reshape(-1)[:total].reshape(orig_shape)
    return y2d.reshape(orig_shape)


# -----------------------------------------------------------------------------
# Backbone: sequential application of layer kernels.  The base class has no
# layers, so forward(x) == x and we skip any kernel entirely (no HBM traffic).
# -----------------------------------------------------------------------------
class Backbone:
    def __init__(self):
        # Base class: empty layer list (mirrors nn.ModuleList()).
        self.layers = []

    def forward(self, x):
        for layer in self.layers:
            x = layer(x)
        # No layers -> identity; returning x directly avoids a pure-copy
        # kernel's full HBM read+write.
        return x

    def __call__(self, x):
        return self.forward(x)


if __name__ == "__main__":
    key = jax.random.PRNGKey(0)
    x = jax.random.normal(key, (2, 4, 16, 16), dtype=jnp.float32)  # NCHW

    # Module semantics: base-class Backbone forward is identity (no kernel).
    model = Backbone()
    y = jax.block_until_ready(model(x))
    assert y.shape == x.shape and y.dtype == x.dtype
    assert bool(jnp.array_equal(y, x)), "Backbone (no layers) must be identity"

    # Exercise the Pallas tiled pass-through driver (the subclass fusion
    # point) on-device and verify exact identity.
    y_k = jax.block_until_ready(pallas_passthrough(x))
    assert y_k.shape == x.shape and y_k.dtype == x.dtype
    assert bool(jnp.array_equal(y_k, x)), "Pallas pass-through must be identity"

    # bf16 + awkward (non-multiple-of-128) size exercises the dtype-aware
    # sublane rounding and the lane-dense pad/slice path.
    xb = jax.random.normal(jax.random.PRNGKey(0), (2, 3, 5, 7)).astype(jnp.bfloat16)
    yb = jax.block_until_ready(pallas_passthrough(xb))
    assert yb.shape == xb.shape and yb.dtype == xb.dtype
    assert bool(jnp.array_equal(yb, xb)), "Padded pass-through must be identity"

    print("KERNEL_OK")
</pallas_src>

<mosaic_0001>
module attributes {stable_mosaic.version = 11 : i64} {
  func.func @_copy_kernel(%arg0: i32, %arg1: memref<8x256xf32, #tpu.memory_space<vmem>>, %arg2: memref<8x256xf32, #tpu.memory_space<vmem>>) attributes {dimension_semantics = [#tpu.dimension_semantics<parallel>], iteration_bounds = array<i64: 1>, scalar_prefetch = 0 : i64, scratch_operands = 0 : i64, tpu.core_type = #tpu.core_type<tc>, window_params = [{transform_indices = @transform_0, window_bounds = array<i64: 8, 256>}, {transform_indices = @transform_1, window_bounds = array<i64: 8, 256>}]} {
    %c0 = arith.constant 0 : index
    %c0_0 = arith.constant 0 : index
    %0 = vector.load %arg1[%c0, %c0_0] : memref<8x256xf32, #tpu.memory_space<vmem>>, vector<8x256xf32>
    %c0_1 = arith.constant 0 : index
    %c0_2 = arith.constant 0 : index
    %1 = vector.load %arg2[%c0_1, %c0_2] : memref<8x256xf32, #tpu.memory_space<vmem>>, vector<8x256xf32>
    tpu.vector_store %arg2[%c0_1, %c0_2], %0 {strides = array<i32>} : memref<8x256xf32, #tpu.memory_space<vmem>>, vector<8x256xf32>,
    return
  }
  func.func @transform_0(%arg0: i32) -> (i32, i32) {
    %c0_i32 = arith.constant 0 : i32
    %c0_i32_0 = arith.constant 0 : i32
    return %arg0, %c0_i32 : i32, i32
  }
  func.func @transform_1(%arg0: i32) -> (i32, i32) {
    %c0_i32 = arith.constant 0 : i32
    %c0_i32_0 = arith.constant 0 : i32
    return %arg0, %c0_i32 : i32, i32
  }
}

</mosaic_0001>

<bundles_post_ra>
// kernel: pallas_passthrough.1
= control target key start
LH: loop header
LB: loop body
LE: loop exit
PB: predicated region body
PF: predicated region fallthrough
CT: control target
= control target key end

     0   :  { %s38_s0 = inlined_call_operand.vmem [shape: f32[8,256], index: 0, kind: input, shape index: {}, may-alias: {0,1}]   ;;  %s39_s1 = inlined_call_operand.vmem [shape: f32[8,256], index: 1, kind: output, shape index: {}, may-alias: {0,1}]  }
   0x1   :  { %v8_v0 = vld [vmem:[%s38_s0] sm:$0xff]  ;;  %v9_v1 = vld [vmem:[%s38_s0 + $0x8] sm:$0xff] }
   0x2   :  { %10 = vst [vmem:[%s39_s1] sm:$0xff] %v8_v0 }
   0x3   :  { %11 = vst [vmem:[%s39_s1 + $0x8] sm:$0xff] %v9_v1 }

</bundles_post_ra>
